<compile_context>
chip_gen: v6e
topology: v6e:2x2x1
jax: 0.10.0
libtpu: 0.0.40
codegen_flags: <defaults>
</compile_context>

<pallas_src>
import functools

import jax
import jax.numpy as jnp
from jax.experimental import pallas as pl
from jax.experimental.pallas import tpu as pltpu


_PER_BUFFER_BUDGET = 16 << 20   # lp tile + lane-padded label tile, per pipeline buffer
_ROW_TILE_CAP = 16384
_V_TILE_CAP = 32768             # keeps the (1, tile_v) f32 accumulator <= 1 MiB
_LBL_ROW_BYTES = 128 * 4        # a (tile_n, 1) int32 block is lane-padded to 128 lanes


def _vae_loss_kernel(mu_ref, lv_ref, xhat_ref, lbl_ref, out_ref, acc_ref, *,
                     tiles_per_core, num_v_tiles, tile_v):
    c = pl.program_id(0)      # partial / TensorCore index        ("parallel")
    j = pl.program_id(1)      # row-tile index within the partial ("arbitrary")
    k = pl.program_id(2)      # class-axis tile index             ("arbitrary")

    @pl.when(jnp.logical_and(j == 0, k == 0))
    def _init():
        acc_ref[...] = jnp.zeros_like(acc_ref)

    # ---- NLL pick: lp[r, label[r]] via lane-iota compare --------------------
    # Labels were padded with -1 on the host for rows >= N and for duplicated
    # clamped tiles, so `col == lbl` alone masks every invalid element,
    # including the undefined contents of partial / clamped lp blocks.
    # Keep the select; do NOT turn it into a multiply-by-mask (garbage * 0).
    lp = xhat_ref[...]                                # (tile_n, tile_v), native dtype
    lbl = lbl_ref[...]                                # (tile_n, 1) int32, -1 = ignore
    col = k * tile_v + jax.lax.broadcasted_iota(jnp.int32, lp.shape, 1)
    sel = jnp.where(col == lbl, lp, jnp.zeros_like(lp))
    # Sublane-axis fold only (pure vreg adds); widen to f32 during the reduce.
    acc_ref[...] += jnp.sum(sel, axis=0, keepdims=True, dtype=jnp.float32)

    # ---- finalize: KL (partial 0 only) + pack into one lane-dense block -----
    @pl.when(jnp.logical_and(j == tiles_per_core - 1, k == num_v_tiles - 1))
    def _finalize():
        total = jnp.sum(acc_ref[...], keepdims=True)                      # (1, 1)
        mu = mu_ref[...].astype(jnp.float32)
        lv = lv_ref[...].astype(jnp.float32)
        kl_full = -0.5 * jnp.sum(1.0 + lv - mu * mu - jnp.exp(lv), keepdims=True)
        kl = jnp.where(c == 0, kl_full, jnp.zeros_like(kl_full))          # count once
        lane = jax.lax.broadcasted_iota(jnp.int32, (1, 128), 1)
        out_ref[...] = jnp.where(
            lane == 0, jnp.broadcast_to(total, (1, 128)),
            jnp.where(lane == 1, jnp.broadcast_to(kl, (1, 128)),
                      jnp.zeros((1, 128), jnp.float32)))


def _round_down(x, m):
    return (x // m) * m


def _choose_tiles(n_rows, vocab, itemsize):
    """Pick (tile_n, tile_v): the largest row tile whose (lp + padded-label)
    bytes fit the per-buffer budget; very wide class axes are chunked
    lane-aligned so the row tile never degenerates."""
    row_mult = max(8, 32 // itemsize)       # 8 f32 / 16 bf16 / 32 int8 sublane packing
    tile_v = vocab if vocab <= _V_TILE_CAP else _V_TILE_CAP
    row_bytes = tile_v * itemsize + _LBL_ROW_BYTES
    max_rows = max(1, _PER_BUFFER_BUDGET // row_bytes)
    if n_rows <= max_rows:
        return n_rows, tile_v               # single full-extent row block
    tile_n = max(row_mult, _round_down(min(_ROW_TILE_CAP, max_rows), row_mult))
    return tile_n, tile_v


def _num_tensorcores():
    """Best-effort TensorCores-per-chip query; defaults to 1 (always safe)."""
    try:
        info = pltpu.get_tpu_info()
        for name in ("num_cores", "core_count", "num_tensorcores",
                     "tensorcores_per_chip"):
            val = getattr(info, name, None)
            if val is not None and int(val) > 0:
                return int(val)
    except Exception:
        pass
    try:
        return max(1, int(getattr(jax.devices()[0], "num_cores", 1)))
    except Exception:
        return 1


def t_vae_loss(mu, log_var, z, x_hat_param, x, *,
               tile_n=None, tile_v=None, num_partials=None):
    """Returns (elbo, kl_loss, recon_loss) as float32 scalars."""
    del z                                       # unused by the reference module
    b, s, v = x_hat_param.shape
    n = b * s
    lp = x_hat_param.reshape(n, v)              # keep native dtype (bf16 stays bf16)
    mu2 = mu.reshape(1, -1)
    lv2 = log_var.reshape(1, -1)

    auto_tn, auto_tv = _choose_tiles(n, v, lp.dtype.itemsize)
    tile_n = auto_tn if tile_n is None else tile_n
    tile_v = auto_tv if tile_v is None else tile_v
    assert tile_n == n or tile_n % 8 == 0, "tile_n must be n or a multiple of 8"
    assert tile_v == v or tile_v % 128 == 0, "tile_v must be V or a multiple of 128"

    num_row_tiles = pl.cdiv(n, tile_n)
    num_v_tiles = pl.cdiv(v, tile_v)
    if num_partials is None:
        # Split across the 2 TensorCores only where they exist (v7x); on
        # single-TC chips (v5e/v6e) a second partial is pure overhead.
        num_partials = 2 if (_num_tensorcores() >= 2 and num_row_tiles >= 2) else 1
    num_partials = max(1, min(num_partials, num_row_tiles))
    tiles_per_core = pl.cdiv(num_row_tiles, num_partials)

    # Labels: pad to the full (partials x tiles x tile_n) logical extent with
    # -1 so tail rows and duplicated clamped tiles select nothing in-kernel.
    padded_rows = num_partials * tiles_per_core * tile_n
    lbl = jnp.full((padded_rows,), -1, dtype=jnp.int32)
    lbl = lbl.at[:n].set(x.reshape(n).astype(jnp.int32)).reshape(padded_rows, 1)

    def lp_map(c, j, k):
        # Duplicated tail tiles are clamped; their labels are -1 so they
        # contribute nothing (reads are deterministic, in-bounds data).
        return (jnp.minimum(c * tiles_per_core + j, num_row_tiles - 1), k)

    def lbl_map(c, j, k):
        return (c * tiles_per_core + j, 0)      # label array covers full extent

    kernel = functools.partial(_vae_loss_kernel,
                               tiles_per_core=tiles_per_core,
                               num_v_tiles=num_v_tiles, tile_v=tile_v)

    # Explicit VMEM budget: double-buffered (lp + padded-label) tiles, the
    # lane-shaped accumulator, tiny resident blocks, plus headroom; capped at
    # 48 MiB so it also fits v7x's 64 MiB VMEM.
    working = (2 * (tile_n * tile_v * lp.dtype.itemsize + tile_n * _LBL_ROW_BYTES)
               + 8 * tile_v * 4
               + 2 * 4 * (mu2.size + lv2.size) + 2 * num_partials * 128 * 4)
    vmem_limit = int(min(48 << 20, max(working + (8 << 20), 24 << 20)))

    partials = pl.pallas_call(
        kernel,
        out_shape=jax.ShapeDtypeStruct((num_partials, 128), jnp.float32),
        grid_spec=pltpu.PrefetchScalarGridSpec(
            num_scalar_prefetch=0,
            grid=(num_partials, tiles_per_core, num_v_tiles),
            in_specs=[
                pl.BlockSpec(mu2.shape, lambda c, j, k: (0, 0)),    # resident, tiny
                pl.BlockSpec(lv2.shape, lambda c, j, k: (0, 0)),    # resident, tiny
                pl.BlockSpec((tile_n, tile_v), lp_map),             # big, pipelined
                pl.BlockSpec((tile_n, 1), lbl_map),                 # labels (-1 padded)
            ],
            out_specs=pl.BlockSpec((1, 128), lambda c, j, k: (c, 0)),
            scratch_shapes=[pltpu.VMEM((1, tile_v), jnp.float32)],  # lane-shaped acc
        ),
        compiler_params=pltpu.CompilerParams(
            dimension_semantics=("parallel", "arbitrary", "arbitrary"),
            vmem_limit_bytes=vmem_limit),
    )(mu2, lv2, lp, lbl)

    sum_lp = jnp.sum(partials[:, 0])
    kl = jnp.sum(partials[:, 1])
    recon = -sum_lp / jnp.float32(n)            # NLLLoss mean applied exactly once
    elbo = kl + recon
    return elbo, kl, recon


def _reference(mu, log_var, x_hat_param, x):
    mu = mu.astype(jnp.float32)
    log_var = log_var.astype(jnp.float32)
    kl = -0.5 * jnp.sum(1.0 + log_var - mu ** 2 - jnp.exp(log_var))
    b, s, v = x_hat_param.shape
    lp = x_hat_param.reshape(b * s, v).astype(jnp.float32)
    tgt = x.reshape(b * s)
    recon = -jnp.mean(jnp.take_along_axis(lp, tgt[:, None], axis=1))
    return kl + recon, kl, recon


if __name__ == "__main__":
    def check(got, ref, tag, rtol, atol):
        for name, g, r in zip(("elbo", "kl", "recon"), got, ref):
            assert jnp.allclose(g, r, rtol=rtol, atol=atol), (tag, name, g, r)

    # --- Test 1: auto tiling, f32 log-probs (single tile, single partial) ----
    k1, k2, k3, k4, k5 = jax.random.split(jax.random.PRNGKey(0), 5)
    B, S, V, L = 2, 37, 128, 32
    mu = jax.random.normal(k1, (B, L), dtype=jnp.float32)
    log_var = jax.random.normal(k2, (B, L), dtype=jnp.float32) * 0.1
    z = jax.random.normal(k3, (B, L), dtype=jnp.float32)
    x_hat = jax.nn.log_softmax(
        jax.random.normal(k4, (B, S, V), dtype=jnp.float32), axis=-1)
    x = jax.random.randint(k5, (B, S), 0, V, dtype=jnp.int32)
    out = jax.block_until_ready(t_vae_loss(mu, log_var, z, x_hat, x))
    check(out, _reference(mu, log_var, x_hat, x), "auto", rtol=1e-5, atol=1e-5)

    # --- Test 2: forced small tiles -> exercises row tail masking, duplicated
    # clamped tile (2 partials), V-axis split with a partial last class tile,
    # and the native-dtype (bf16) select path.
    k1, k2, k3, k4, k5 = jax.random.split(jax.random.PRNGKey(1), 5)
    B, S, V, L = 2, 37, 384, 16
    mu = jax.random.normal(k1, (B, L), dtype=jnp.float32)
    log_var = jax.random.normal(k2, (B, L), dtype=jnp.float32) * 0.1
    z = jax.random.normal(k3, (B, L), dtype=jnp.float32)
    x_hat = jax.nn.log_softmax(
        jax.random.normal(k4, (B, S, V), dtype=jnp.float32),
        axis=-1).astype(jnp.bfloat16)
    x = jax.random.randint(k5, (B, S), 0, V, dtype=jnp.int32)
    out = jax.block_until_ready(
        t_vae_loss(mu, log_var, z, x_hat, x, tile_n=16, tile_v=256, num_partials=2))
    check(out, _reference(mu, log_var, x_hat, x), "forced", rtol=1e-4, atol=1e-4)

    print("KERNEL_OK")
</pallas_src>

<mosaic_0001>
module attributes {stable_mosaic.version = 11 : i64} {
  func.func @_vae_loss_kernel(%arg0: i32, %arg1: i32, %arg2: i32, %arg3: memref<1x64xf32, #tpu.memory_space<vmem>>, %arg4: memref<1x64xf32, #tpu.memory_space<vmem>>, %arg5: memref<74x128xf32, #tpu.memory_space<vmem>>, %arg6: memref<74x1xi32, #tpu.memory_space<vmem>>, %arg7: memref<1x128xf32, #tpu.memory_space<vmem>>, %arg8: memref<1x128xf32, #tpu.memory_space<vmem>>) attributes {dimension_semantics = [#tpu.dimension_semantics<parallel>, #tpu.dimension_semantics<arbitrary>, #tpu.dimension_semantics<arbitrary>], iteration_bounds = array<i64: 1, 1, 1>, scalar_prefetch = 0 : i64, scratch_operands = 1 : i64, tpu.core_type = #tpu.core_type<tc>, window_params = [{pipeline_mode = #tpu.pipeline_mode<synchronous>, transform_indices = @transform_0, window_bounds = array<i64: 1, 64>}, {pipeline_mode = #tpu.pipeline_mode<synchronous>, transform_indices = @transform_1, window_bounds = array<i64: 1, 64>}, {transform_indices = @transform_2, window_bounds = array<i64: 74, 128>}, {transform_indices = @transform_3, window_bounds = array<i64: 74, 1>}, {transform_indices = @transform_4, window_bounds = array<i64: 1, 128>}]} {
    %c0_i32 = arith.constant 0 : i32
    %0 = arith.cmpi eq, %arg1, %c0_i32 : i32
    %c0_i32_0 = arith.constant 0 : i32
    %1 = arith.cmpi eq, %arg2, %c0_i32_0 : i32
    %2 = arith.andi %0, %1 : i1
    %3 = arith.extui %2 : i1 to i32
    %c0_i32_1 = arith.constant 0 : i32
    %4 = arith.cmpi ne, %3, %c0_i32_1 : i32
    scf.if %4 {
      %cst_13 = arith.constant 0.000000e+00 : f32
      %25 = vector.broadcast %cst_13 : f32 to vector<1x128xf32>
      %c0_14 = arith.constant 0 : index
      %c0_15 = arith.constant 0 : index
      %26 = vector.load %arg8[%c0_14, %c0_15] : memref<1x128xf32, #tpu.memory_space<vmem>>, vector<1x128xf32>
      tpu.vector_store %arg8[%c0_14, %c0_15], %25 {strides = array<i32>} : memref<1x128xf32, #tpu.memory_space<vmem>>, vector<1x128xf32>,
    } else {
    }
    %c0 = arith.constant 0 : index
    %c0_2 = arith.constant 0 : index
    %5 = vector.load %arg5[%c0, %c0_2] : memref<74x128xf32, #tpu.memory_space<vmem>>, vector<74x128xf32>
    %c0_3 = arith.constant 0 : index
    %c0_4 = arith.constant 0 : index
    %6 = vector.load %arg6[%c0_3, %c0_4] : memref<74x1xi32, #tpu.memory_space<vmem>>, vector<74x1xi32>
    %c128_i32 = arith.constant 128 : i32
    %7 = arith.muli %arg2, %c128_i32 : i32
    %8 = tpu.iota {dimensions = array<i32: 1>} : vector<74x128xi32>
    %9 = vector.broadcast %7 : i32 to vector<74x128xi32>
    %10 = arith.addi %9, %8 : vector<74x128xi32>
    %11 = vector.broadcast %6 : vector<74x1xi32> to vector<74x128xi32>
    %12 = arith.cmpi eq, %10, %11 : vector<74x128xi32>
    %cst = arith.constant 0.000000e+00 : f32
    %13 = vector.broadcast %cst : f32 to vector<74x128xf32>
    %14 = arith.select %12, %5, %13 : vector<74x128xi1>, vector<74x128xf32>
    %c0_5 = arith.constant 0 : index
    %c0_6 = arith.constant 0 : index
    %15 = vector.load %arg8[%c0_5, %c0_6] : memref<1x128xf32, #tpu.memory_space<vmem>>, vector<1x128xf32>
    %cst_7 = arith.constant dense<0.000000e+00> : vector<128xf32>
    %16 = vector.multi_reduction <add>, %14, %cst_7 [0] : vector<74x128xf32> to vector<128xf32>
    %17 = vector.shape_cast %16 : vector<128xf32> to vector<1x128xf32>
    %18 = arith.addf %15, %17 : vector<1x128xf32>
    %c0_8 = arith.constant 0 : index
    %c0_9 = arith.constant 0 : index
    %19 = vector.load %arg8[%c0_8, %c0_9] : memref<1x128xf32, #tpu.memory_space<vmem>>, vector<1x128xf32>
    tpu.vector_store %arg8[%c0_8, %c0_9], %18 {strides = array<i32>} : memref<1x128xf32, #tpu.memory_space<vmem>>, vector<1x128xf32>,
    %c0_i32_10 = arith.constant 0 : i32
    %20 = arith.cmpi eq, %arg1, %c0_i32_10 : i32
    %c0_i32_11 = arith.constant 0 : i32
    %21 = arith.cmpi eq, %arg2, %c0_i32_11 : i32
    %22 = arith.andi %20, %21 : i1
    %23 = arith.extui %22 : i1 to i32
    %c0_i32_12 = arith.constant 0 : i32
    %24 = arith.cmpi ne, %23, %c0_i32_12 : i32
    scf.if %24 {
      %c0_13 = arith.constant 0 : index
      %c0_14 = arith.constant 0 : index
      %25 = vector.load %arg8[%c0_13, %c0_14] : memref<1x128xf32, #tpu.memory_space<vmem>>, vector<1x128xf32>
      %26 = vector.shape_cast %25 : vector<1x128xf32> to vector<1x1x128xf32>
      %cst_15 = arith.constant dense<0.000000e+00> : vector<1xf32>
      %27 = vector.multi_reduction <add>, %26, %cst_15 [1, 2] : vector<1x1x128xf32> to vector<1xf32>
      %28 = vector.shape_cast %27 : vector<1xf32> to vector<1x1x1xf32>
      %29 = vector.extract %28[0, 0, 0] : f32 from vector<1x1x1xf32>
      %30 = vector.broadcast %29 : f32 to vector<1x1xf32>
      %c0_16 = arith.constant 0 : index
      %c0_17 = arith.constant 0 : index
      %31 = vector.load %arg3[%c0_16, %c0_17] : memref<1x64xf32, #tpu.memory_space<vmem>>, vector<1x64xf32>
      %c0_18 = arith.constant 0 : index
      %c0_19 = arith.constant 0 : index
      %32 = vector.load %arg4[%c0_18, %c0_19] : memref<1x64xf32, #tpu.memory_space<vmem>>, vector<1x64xf32>
      %cst_20 = arith.constant 1.000000e+00 : f32
      %33 = vector.broadcast %cst_20 : f32 to vector<1x64xf32>
      %34 = arith.addf %33, %32 : vector<1x64xf32>
      %35 = arith.mulf %31, %31 : vector<1x64xf32>
      %36 = arith.subf %34, %35 : vector<1x64xf32>
      %37 = math.exp %32 : vector<1x64xf32>
      %38 = arith.subf %36, %37 : vector<1x64xf32>
      %39 = vector.shape_cast %38 : vector<1x64xf32> to vector<1x1x64xf32>
      %cst_21 = arith.constant dense<0.000000e+00> : vector<1xf32>
      %40 = vector.multi_reduction <add>, %39, %cst_21 [1, 2] : vector<1x1x64xf32> to vector<1xf32>
      %41 = vector.shape_cast %40 : vector<1xf32> to vector<1x1x1xf32>
      %42 = vector.extract %41[0, 0, 0] : f32 from vector<1x1x1xf32>
      %43 = vector.broadcast %42 : f32 to vector<1x1xf32>
      %cst_22 = arith.constant -5.000000e-01 : f32
      %44 = vector.broadcast %cst_22 : f32 to vector<1x1xf32>
      %45 = arith.mulf %44, %43 : vector<1x1xf32>
      %c0_i32_23 = arith.constant 0 : i32
      %46 = arith.cmpi eq, %arg0, %c0_i32_23 : i32
      %cst_24 = arith.constant 0.000000e+00 : f32
      %47 = vector.broadcast %cst_24 : f32 to vector<1x1xf32>
      %48 = arith.select %46, %45, %47 : vector<1x1xf32>
      %49 = tpu.iota {dimensions = array<i32: 1>} : vector<1x128xi32>
      %c0_i32_25 = arith.constant 0 : i32
      %50 = vector.broadcast %c0_i32_25 : i32 to vector<1x128xi32>
      %51 = arith.cmpi eq, %49, %50 : vector<1x128xi32>
      %52 = vector.shape_cast %30 : vector<1x1xf32> to vector<1x1xf32>
      %53 = vector.broadcast %52 : vector<1x1xf32> to vector<1x128xf32>
      %c1_i32 = arith.constant 1 : i32
      %54 = vector.broadcast %c1_i32 : i32 to vector<1x128xi32>
      %55 = arith.cmpi eq, %49, %54 : vector<1x128xi32>
      %56 = vector.shape_cast %48 : vector<1x1xf32> to vector<1x1xf32>
      %57 = vector.broadcast %56 : vector<1x1xf32> to vector<1x128xf32>
      %cst_26 = arith.constant 0.000000e+00 : f32
      %58 = vector.broadcast %cst_26 : f32 to vector<1x128xf32>
      %59 = arith.select %55, %57, %58 : vector<1x128xi1>, vector<1x128xf32>
      %60 = arith.select %51, %53, %59 : vector<1x128xi1>, vector<1x128xf32>
      %c0_27 = arith.constant 0 : index
      %c0_28 = arith.constant 0 : index
      %61 = vector.load %arg7[%c0_27, %c0_28] : memref<1x128xf32, #tpu.memory_space<vmem>>, vector<1x128xf32>
      tpu.vector_store %arg7[%c0_27, %c0_28], %60 {strides = array<i32>} : memref<1x128xf32, #tpu.memory_space<vmem>>, vector<1x128xf32>,
    } else {
    }
    return
  }
  func.func @transform_0(%arg0: i32, %arg1: i32, %arg2: i32) -> (i32, i32) {
    %c0_i32 = arith.constant 0 : i32
    %c0_i32_0 = arith.constant 0 : i32
    %c0_i32_1 = arith.constant 0 : i32
    return %c0_i32, %c0_i32_0 : i32, i32
  }
  func.func @transform_1(%arg0: i32, %arg1: i32, %arg2: i32) -> (i32, i32) {
    %c0_i32 = arith.constant 0 : i32
    %c0_i32_0 = arith.constant 0 : i32
    %c0_i32_1 = arith.constant 0 : i32
    return %c0_i32, %c0_i32_0 : i32, i32
  }
  func.func @transform_2(%arg0: i32, %arg1: i32, %arg2: i32) -> (i32, i32) {
    %c1_i32 = arith.constant 1 : i32
    %0 = arith.muli %arg0, %c1_i32 : i32
    %1 = arith.addi %0, %arg1 : i32
    %c0_i32 = arith.constant 0 : i32
    %2 = arith.minsi %1, %c0_i32 : i32
    %c0_i32_0 = arith.constant 0 : i32
    return %2, %arg2 : i32, i32
  }
  func.func @transform_3(%arg0: i32, %arg1: i32, %arg2: i32) -> (i32, i32) {
    %c1_i32 = arith.constant 1 : i32
    %0 = arith.muli %arg0, %c1_i32 : i32
    %1 = arith.addi %0, %arg1 : i32
    %c0_i32 = arith.constant 0 : i32
    %c0_i32_0 = arith.constant 0 : i32
    return %1, %c0_i32 : i32, i32
  }
  func.func @transform_4(%arg0: i32, %arg1: i32, %arg2: i32) -> (i32, i32) {
    %c0_i32 = arith.constant 0 : i32
    %c0_i32_0 = arith.constant 0 : i32
    return %arg0, %c0_i32 : i32, i32
  }
}

</mosaic_0001>

<bundles_post_ra>
// kernel: tpu_custom_call.1
= control target key start
LH: loop header
LB: loop body
LE: loop exit
PB: predicated region body
PF: predicated region fallthrough
CT: control target
= control target key end

     0   :  { %v279_v2 = vmov 0   ;;  %s390_s0 = inlined_call_operand.vmem [shape: f32[1,64], index: 0, kind: input, shape index: {}]   ;;  %s391_s1 = inlined_call_operand.vmem [shape: f32[1,64], index: 1, kind: input, shape index: {}]   ;;  %s392_s2 = inlined_call_operand.vmem [shape: f32[74,128], index: 2, kind: input, shape index: {}]   ;;  %s393_s3 = inlined_call_operand.vmem [shape: s32[74,1], index: 3, kind: input, shape index: {}]   ;;  %s394_s4 = inlined_call_operand.hbm [shape: f32[1,128], index: 4, kind: output, shape index: {}]  }
   0x1   :  { %v91_v0 = vld [vmem:[%s393_s3 + $0x10] sm:$0xff]  ;;  %v89_v1 = vld [vmem:[%s393_s3] sm:$0xff]  ;;  %254 = vset.pattern.permute.xlu1 %v279_v2  ;;  %253 = vset.pattern.permute.xlu0 %v279_v2  ;;  %v92_v3 = vld [vmem:[%s393_s3 + $0x18] sm:$0xff] }
   0x2   :  { %111 = vperm.xlu1 %254, %v91_v0   ;;  %105 = vperm.xlu0 %253, %v89_v1   ;;  %v90_v4 = vld [vmem:[%s393_s3 + $0x8] sm:$0xff] }
   0x3   :  { %9 = vsyncpa [#allocation4], 0  ;;  %v94_v5 = vld [vmem:[%s393_s3 + $0x28] sm:$0xff]  ;;  %v93_v6 = vld [vmem:[%s393_s3 + $0x20] sm:$0xff]  ;;  %v280_v11 = vmov 0.0   ;;  %vm196_vm0 = vcmask 516096   ;;  %v100_v21 = vlaneseq }
   0x4   :  { %v96_v7 = vld [vmem:[%s393_s3 + $0x38] sm:$0xff]  ;;  %v95_v8 = vld [vmem:[%s393_s3 + $0x30] sm:$0xff]  ;;  %v98_v9 = vld [vmem:[%s393_s3 + $0x48] sm:$0x3]  ;;  %78 = vst [vmem:[#allocation2] sm:$0x1] %v280_v11 }
   0x5   :  { %v97_v10 = vld [vmem:[%s393_s3 + $0x40] sm:$0xff]  ;;  %v343_v22 = vand.u32 127, %v100_v21  ;;  %v80_v26 = vld [vmem:[%s392_s2 + $0x8] sm:$0xff]  ;;  %v81_v29 = vld [vmem:[%s392_s2 + $0x10] sm:$0xff]  ;;  %vm163_vm11 = vcmask 1041408   ;;  %vm177_vm12 = vcmask 1040384  }
   0x6   :  { %114 = vperm.xlu1 %254, %v92_v3   ;;  %108 = vperm.xlu0 %253, %v90_v4   ;;  %v189_v12 = vld [vmem:[%s391_s1] sm:$0x1]  ;;  %v82_v32 = vld [vmem:[%s392_s2 + $0x18] sm:$0xff]  ;;  %v84_v40 = vld [vmem:[%s392_s2 + $0x28] sm:$0xff]  ;;  %s281_s5 = smov [#allocation3]  }
   0x7   :  { %v193_v13 = vmul.f32 1.442695, %v189_v12  ;;  %v188_v14 = vld [vmem:[%s390_s0] sm:$0x1]  ;;  %v190_v15 = vadd.f32 1.0, %v189_v12  ;;  %v85_v46 = vld [vmem:[%s392_s2 + $0x30] sm:$0xff] }
   0x8   :  { %v191_v16 = vmul.f32 %v188_v14, %v188_v14  ;;  %v79_v25 = vld [vmem:[%s392_s2] sm:$0xff]  ;;  %v86_v48 = vld [vmem:[%s392_s2 + $0x38] sm:$0xff]  ;;  %v88_v52 = vld [vmem:[%s392_s2 + $0x48] sm:$0x3]  ;;  %vm216_vm13 = vcmp.eq.s32.totalorder %v343_v22, 1  ;;  %s226_s6 = sshll.u32 %s281_s5, 4  ;;  %s227_s6 = int_to_ptr.vmem [resolvable:$true] %s226_s6 }
   0x9   :  { %255 = vpow2.f32 %v193_v13  ;;  %v83_v38 = vld [vmem:[%s392_s2 + $0x20] sm:$0xff]  ;;  %vm214_vm14 = vcmp.eq.s32.totalorder %v343_v22, 0  ;;  %s257_s7 = scalar_lea.vmem %s227_s6, 16  ;;  %s261_s8 = scalar_lea.vmem %s227_s6, 32 }
   0xa   :  { %120 = vperm.xlu1 %254, %v94_v5   ;;  %117 = vperm.xlu0 %253, %v93_v6   ;;  %v192_v17 = vsub.f32 %v190_v15, %v191_v16  ;;  %v87_v55 = vld [vmem:[%s392_s2 + $0x40] sm:$0xff]  ;;  %p258_p0 = scmp.ne.s32.totalorder %s227_s6, %s257_s7  ;;  %p262_p1 = scmp.lt.s32.totalorder %s227_s6, %s227_s6 }
   0xb   :  { %v154_v4 = vld [vmem:[#allocation2] sm:$0x1]  ;;  %p263_p2 = scmp.lt.s32.totalorder %s261_s8, %s257_s7 }
   0xd   :  { %p264_p3 = por %p263_p2, %p262_p1 }
   0xe   :  { %126 = vperm.xlu1 %254, %v96_v7   ;;  %123 = vperm.xlu0 %253, %v95_v8  }
   0xf   :  { %p265_p4 = pnand %p264_p3, %p258_p0 }
  0x12   :  { %132 = vperm.xlu1 %254, %v98_v9   ;;  %129 = vperm.xlu0 %253, %v97_v10  }
  0x16   :  { %v256_v18 = vpop.eup %255 }
  0x17   :  { %v195_v19 = vsub.f32 %v192_v17, %v256_v18 }
  0x19   :  { %v197_v20 = vsel %vm196_vm0, %v195_v19, 0.0 }
  0x36   :  { %198 = vadd.xlane.f32.xlu1 %v197_v20 }
  0x7d   :  { %v112_v23 = vpop.permute.xlu1 %111  ;;  %v106_v24 = vpop.permute.xlu0 %105 }
  0x7e   :  { %vm134_vm1 = vcmp.eq.s32.totalorder %v343_v22, %v106_v24  ;;  %vm136_vm2 = vcmp.eq.s32.totalorder %v343_v22, %v112_v23 }
  0x7f   :  { %v144_v30 = vsel %vm134_vm1, %v79_v25, 0.0  ;;  %v146_v34 = vsel %vm136_vm2, %v81_v29, 0.0 }
  0x81   :  { %v115_v27 = vpop.permute.xlu1 %114  ;;  %v109_v28 = vpop.permute.xlu0 %108 }
  0x82   :  { %vm135_vm3 = vcmp.eq.s32.totalorder %v343_v22, %v109_v28  ;;  %vm137_vm4 = vcmp.eq.s32.totalorder %v343_v22, %v115_v27 }
  0x83   :  { %v145_v31 = vsel %vm135_vm3, %v80_v26, 0.0  ;;  %v147_v39 = vsel %vm137_vm4, %v82_v32, 0.0 }
  0x84   :  { %v155_v33 = vadd.f32 %v145_v31, %v144_v30 }
  0x85   :  { %v121_v35 = vpop.permute.xlu1 %120  ;;  %v118_v36 = vpop.permute.xlu0 %117 }
  0x86   :  { %v156_v37 = vadd.f32 %v155_v33, %v146_v34  ;;  %vm138_vm5 = vcmp.eq.s32.totalorder %v343_v22, %v118_v36  ;;  %vm139_vm6 = vcmp.eq.s32.totalorder %v343_v22, %v121_v35 }
  0x87   :  { %v148_v42 = vsel %vm138_vm5, %v83_v38, 0.0  ;;  %v149_v47 = vsel %vm139_vm6, %v84_v40, 0.0 }
  0x88   :  { %v157_v41 = vadd.f32 %v156_v37, %v147_v39 }
  0x89   :  { %v127_v43 = vpop.permute.xlu1 %126  ;;  %v124_v44 = vpop.permute.xlu0 %123 }
  0x8a   :  { %v158_v45 = vadd.f32 %v157_v41, %v148_v42  ;;  %vm140_vm7 = vcmp.eq.s32.totalorder %v343_v22, %v124_v44  ;;  %vm141_vm8 = vcmp.eq.s32.totalorder %v343_v22, %v127_v43 }
  0x8b   :  { %v150_v50 = vsel %vm140_vm7, %v85_v46, 0.0  ;;  %v151_v56 = vsel %vm141_vm8, %v86_v48, 0.0 }
  0x8c   :  { %v159_v49 = vadd.f32 %v158_v45, %v149_v47 }
  0x8d   :  { %v133_v51 = vpop.permute.xlu1 %132  ;;  %v130_v53 = vpop.permute.xlu0 %129 }
  0x8e   :  { %v160_v54 = vadd.f32 %v159_v49, %v150_v50  ;;  %vm143_vm9 = vcmp.eq.s32.totalorder %v343_v22, %v133_v51  ;;  %vm142_vm10 = vcmp.eq.s32.totalorder %v343_v22, %v130_v53 }
  0x8f   :  { %v153_v57 = vsel %vm143_vm9, %v88_v52, 0.0  ;;  %v152_v59 = vsel %vm142_vm10, %v87_v55, 0.0 }
  0x90   :  { %v161_v58 = vadd.f32 %v160_v54, %v151_v56  ;;  %v164_v61 = vsel %vm163_vm11, %v153_v57, 0.0 }
  0x92   :  { %v162_v60 = vadd.f32 %v161_v58, %v152_v59 }
  0x94   :  { %v165_v62 = vadd.f32 %v164_v61, %v162_v60 }
  0x96   :  { %v166_v63 = vrot.slane %v165_v62, 4 }
  0x98   :  { %v167_v0 = vadd.f32 %v166_v63, %v165_v62 }
  0x9a   :  { %v168_v1 = vrot.slane %v167_v0, 2 }
  0x9c   :  { %v169_v2 = vadd.f32 %v168_v1, %v167_v0 }
  0x9e   :  { %v170_v3 = vrot.slane %v169_v2, 1 }
  0xa0   :  { %v171_v5 = vadd.f32 %v170_v3, %v169_v2 }
  0xa2   :  { %v172_v6 = vadd.f32 %v171_v5, %v154_v4 }
  0xa4   :  { %173 = vst [vmem:[#allocation2] sm:$0x1] %v172_v6 }
  0xab   :  { %v176_v7 = vld [vmem:[#allocation2] sm:$0x1] }
  0xac   :  { %v178_v8 = vsel %vm177_vm12, %v176_v7, 0.0 }
  0xad   :  { %179 = vadd.xlane.f32.xlu0 %v178_v8 }
  0xbf   :  { %v199_v9 = vpop.xlane.xlu1 %198 }
  0xc0   :  { %v200_v10 = vrot.slane %v199_v9, 4 }
  0xc2   :  { %v201_v11 = vadd.f32 %v200_v10, %v199_v9 }
  0xc4   :  { %v202_v12 = vrot.slane %v201_v11, 2 }
  0xc6   :  { %v203_v16 = vadd.f32 %v202_v12, %v201_v11 }
  0xc8   :  { %v204_v19 = vrot.slane %v203_v16, 1 }
  0xca   :  { %v205_v23 = vadd.f32 %v204_v19, %v203_v16 }
 0x136   :  { %v180_v13 = vpop.xlane.xlu0 %179 }
 0x137   :  { %v181_v14 = vrot.slane %v180_v13, 4 }
 0x139   :  { %v182_v15 = vadd.f32 %v181_v14, %v180_v13 }
 0x13b   :  { %v183_v17 = vrot.slane %v182_v15, 2 }
 0x13d   :  { %v184_v18 = vadd.f32 %v183_v17, %v182_v15 }
 0x13f   :  { %v185_v20 = vrot.slane %v184_v18, 1 }
 0x141   :  { %v186_v21 = vadd.f32 %v185_v20, %v184_v18 }
 0x143   :  { %246 = vpush %v186_v21 }
 0x144   :  { %248 = vpush %v205_v23 }
 0x174   :  { %s247_s2 = spop %246 }
 0x175   :  { %s249_s30 = spop %248  ;;  %v215_v26 = vstv %s247_s2 }
 0x176   :  { %v207_v24 = vstv %s249_s30 }
 0x177   :  { %v208_v25 = vmul.f32 -0.5, %v207_v24 }
 0x179   :  { %v217_v27 = vsel %vm216_vm13, %v208_v25, 0.0 }
 0x17a   :  { %v218_v28 = vsel %vm214_vm14, %v215_v26, %v217_v27 }
 0x17b   :  { %219 = vst [vmem:[#allocation3] sm:$0x1] %v218_v28 }
 0x17c   :  { %268 = shalt.err (!%p265_p4)
}
 0x17d   :  { %229 = dma.vmem_to_hbm [thread:$0]  %s227_s6, 16, %s394_s4, [#allocation4]  }
 0x17e   :  { %277 = dma.done.wait [#allocation4], 16  }
 0x17f   :  { %278 = vsyncadd [#allocation4], 4294967280 }
 0x180   :  { %233 = vsyncpa [#allocation4], 1 }

</bundles_post_ra>
